<compile_context>
chip_gen: v6e
topology: v6e:2x2x1
jax: 0.10.0
libtpu: 0.0.40
codegen_flags: <defaults>
</compile_context>

<pallas_src>
import functools

import numpy as np
import jax
import jax.numpy as jnp
from jax.experimental import pallas as pl
from jax.experimental.pallas import tpu as pltpu

# ----- module "globals" (shapes implied by the PyTorch module) -------------
N_DIM = 8                 # n_dim : per-node feature width
L10 = 8
L11 = 8
DIM_HOP0 = L11            # Spatial_Attention_0 contracts L11 -> dim_hop0 == L11
DIM_HOP1 = 2 * L11        # weights_hops_1 @ con_hop1 (2*L11 rows)
SUP_SIZES = [4, 8]        # self.sup_sizes  ->  sup_sizes = [1, 4, 8]
BATCH = 2
NUM_NODES = 16


# ---------------------------------------------------------------------------
# Pallas kernel: whole attention / aggregation hot path for one graph block
# ---------------------------------------------------------------------------
def _agg_att_mean_kernel(fcat_ref, p_ref, out_ref, *, D, S, K, H0, offs):
    f32 = jnp.float32
    mm = lambda a, b: jnp.dot(a, b, preferred_element_type=f32)
    leaky = lambda v: jnp.where(v >= 0, v, 0.01 * v)          # nn.LeakyReLU()
    sigmoid = lambda v: 0.5 * (jnp.tanh(0.5 * v) + 1.0)       # stable, single EUP op

    def getp(name):                       # static, 8-aligned slab slice
        r0, r, c = offs[name]
        return p_ref[r0:r0 + r, 0:c]

    R = getp('R')              # [(2+K)*D, K+1+3*H0] fused FCAT-side projections
    E1 = getp('E1')            # [K, K*D]     beta1 lane-expander kron(I_K, 1_D)
    Wb1p = getp('Wb1p')        # [K*D, H0]    == G1 @ W_bot   (folded param product)
    TK = getp('TK')            # [K, S*K]     beta1 -> per-graph lane slots
    SelSelT = getp('SelSelT')  # [N, N]       group-sum broadcast (block-diag ones)
    Sel = getp('Sel')          # [GB, N]      group sum
    VB2 = getp('VB2')          # [2*H0, 1+L10]  [va0;vb0 | 0;Vagg0T]
    Mcat = getp('Mcat')        # [N, S+S*K]   output scatter masks
    shift = getp('shift')      # [1, 1]       >= any final logit (hops are sigmoids)

    FCAT = fcat_ref[...]       # [N, (2+K)*D] = [root | tgt | nbr_0..K-1]

    # -- one shared-LHS matmul produces every FCAT-derived quantity ----------
    Z = mm(FCAT, R)                                   # [N, K+1+3*H0]
    c0 = K + 1
    l1 = leaky(Z[:, 0:K])                             # hop-1 attention logits
    l0 = leaky(Z[:, K:K + 1])                         # hop-0 attention logit (column)
    T1 = Z[:, c0:c0 + H0]                             # tgt  @ (Vagg1T @ W_top)
    RT0 = Z[:, c0 + H0:c0 + 2 * H0]                   # root @ (Vagg1T @ W_top)
    P0 = Z[:, c0 + 2 * H0:c0 + 3 * H0]                # tgt  @ (Vagg1T @ W_bot)

    # -- hop-1: softmax over the K neighbour lanes + fused aggregation -------
    m1 = jnp.max(l1, axis=-1, keepdims=True)
    e1 = jnp.exp(l1 - m1)
    beta1 = e1 * pl.reciprocal(jnp.sum(e1, axis=-1, keepdims=True), approx=True)
    FN = FCAT[:, 2 * D:]                              # neighbour features [N, K*D]
    FNW = mm(FN * mm(beta1, E1), Wb1p)                # == agg1 @ W_bot

    # -- hop-0: per-graph softmax over S rows, column form --------------------
    g0 = jnp.max(l0, axis=0, keepdims=True)           # common shift -> per-group exact
    e0 = jnp.exp(l0 - g0)
    beta0 = e0 * pl.reciprocal(mm(SelSelT, e0), approx=True)
    W0 = mm(SelSelT, beta0 * P0)                      # == agg0 @ W_bot (row-broadcast)

    # -- both hop embeddings + (final logit | aggC) in one widened matmul ----
    H = sigmoid(jnp.concatenate([RT0 + W0, T1 + FNW], axis=-1))   # [N, 2*H0]
    Y = mm(H, VB2)                                    # [N, 1+L10]
    lf = leaky(Y[:, 0:1])                             # final attention logit
    e = jnp.exp(lf - shift)                           # bounded shift: no tail XLU reduce
    betaC = e * pl.reciprocal(mm(SelSelT, e), approx=True)
    aggC = Y[:, 1:]                                   # hop1 @ Vagg0T

    # -- single compact per-graph output row: [betaC(S) | beta1(S*K) | fea(L10)]
    b1t = mm(beta1, TK)                               # beta1 tiled into the S slots
    PRE = jnp.concatenate([betaC * Mcat[:, 0:S],
                           b1t * Mcat[:, S:S + S * K],
                           betaC * aggC], axis=-1)    # [N, S + S*K + L10]
    out_ref[...] = mm(Sel, PRE)                       # [GB, S+S*K+L10], one full store


# ---------------------------------------------------------------------------
# Wrapper: gathers, algebraic parameter fusion, slab packing, pallas_call
# ---------------------------------------------------------------------------
def _pack_param_slab(named_mats, min_lanes=128):
    """Stack small matrices into one [R, lanes] slab, 8-aligned row blocks."""
    lanes = min_lanes
    for _, m in named_mats:
        lanes = max(lanes, ((int(m.shape[1]) + 127) // 128) * 128)
    offs, blocks, row = {}, [], 0
    for name, m in named_mats:
        m = jnp.asarray(m, jnp.float32)
        r, c = int(m.shape[0]), int(m.shape[1])
        rpad = ((r + 7) // 8) * 8
        blk = jnp.zeros((rpad, lanes), jnp.float32).at[:r, :c].set(m)
        offs[name] = (row, r, c)
        blocks.append(blk)
        row += rpad
    return jnp.concatenate(blocks, axis=0), offs


def aggregate_att_mean(x, samples, sup_sizes, params, *, graph_block=64):
    sup = [1] + list(sup_sizes)
    S, s2 = sup[1], sup[2]
    K = s2 // S
    B = samples.shape[0]
    D = x.shape[1]
    H0 = DIM_HOP0                              # == L11
    f32 = jnp.float32
    xf = x.astype(f32)

    # ---- graph-block tiling (1-D grid over graph blocks) -------------------
    if B <= graph_block:
        gb = B                                 # single block == full array dims
    else:
        assert graph_block % 8 == 0 and (graph_block * S) % 8 == 0
        gb = graph_block
    b_pad = -(-B // gb) * gb
    n_blk = gb * S                             # hop-1 rows per block

    # ---- gathers (torch.index_select equivalents) --------------------------
    # TODO(synk): gather in-kernel at large batch (scalar-prefetch samples).
    samp_nbr = samples[:, -s2:].reshape(B, S, K)
    samp_tgt = samples[:, -(S + s2):-s2]               # [B, S]
    samp_root = samples[:, 0]                          # [B]

    nbr = xf[samp_nbr].reshape(B, S, K * D)
    tgt = xf[samp_tgt]                                 # [B, S, D]
    root = jnp.broadcast_to(xf[samp_root][:, None, :], (B, S, D))
    wcat = (2 + K) * D
    fcat = jnp.concatenate([root, tgt, nbr], axis=-1).reshape(B * S, wcat)
    if b_pad > B:
        fcat = jnp.concatenate(
            [fcat, jnp.zeros(((b_pad - B) * S, wcat), f32)], axis=0)

    # ---- algebraic parameter fusion (wrapper-side, tiny, done once) --------
    Vsa1T = params['sa1_V'].T.astype(f32)              # [D, L11]
    wa1 = params['sa1_w'][:L11].astype(f32)
    wb1 = params['sa1_w'][L11:].astype(f32)
    va1 = (Vsa1T @ wa1).reshape(D, 1)
    vb1 = (Vsa1T @ wb1).reshape(D, 1)
    Vagg1T = params['V1_h1'].T.astype(f32)             # [D, L11]
    WhopsT = params['W_hops'].T.astype(f32)            # [2*L11, H0]
    Wtp = Vagg1T @ WhopsT[:L11]                        # [D, H0]  temb @ W_top folded
    Wbp = Vagg1T @ WhopsT[L11:]                        # [D, H0]  agg  @ W_bot folded
    Wb1p = jnp.tile(Wbp, (K, 1))                       # [K*D, H0] == G1 @ W_bot
    Vsa0T = params['sa0_V'].T.astype(f32)              # [L11, L10]
    wa0 = params['sa0_w'][:L10].astype(f32)
    wb0 = params['sa0_w'][L10:].astype(f32)
    va0 = (Vsa0T @ wa0).reshape(H0, 1)
    vb0 = (Vsa0T @ wb0).reshape(H0, 1)
    Vagg0T = params['V1_h0'].T.astype(f32)             # [L11, L10]

    # big shared-LHS RHS: FCAT @ R -> [hop1 logits | hop0 logit | T1 | RT0 | P0]
    C = K + 1 + 3 * H0
    R = jnp.zeros((wcat, C), f32)
    R = R.at[D:2 * D, 0:K].set(jnp.tile(va1, (1, K)))                 # tgt term (hop-1)
    R = R.at[2 * D:, 0:K].set(jnp.kron(jnp.eye(K, dtype=f32), vb1))   # nbr terms (hop-1)
    R = R.at[0:D, K:K + 1].set(va1)                                   # root term (hop-0)
    R = R.at[D:2 * D, K:K + 1].set(vb1)                               # tgt  term (hop-0)
    c0 = K + 1
    R = R.at[D:2 * D, c0:c0 + H0].set(Wtp)                            # T1
    R = R.at[0:D, c0 + H0:c0 + 2 * H0].set(Wtp)                       # RT0
    R = R.at[D:2 * D, c0 + 2 * H0:c0 + 3 * H0].set(Wbp)               # P0

    E1 = jnp.kron(jnp.eye(K, dtype=f32), jnp.ones((1, D), f32))       # [K, K*D]
    TK = jnp.tile(jnp.eye(K, dtype=f32), (1, S))                      # [K, S*K]
    VB2 = jnp.zeros((2 * H0, 1 + L10), f32)
    VB2 = VB2.at[0:H0, 0:1].set(va0)
    VB2 = VB2.at[H0:, 0:1].set(vb0)
    VB2 = VB2.at[H0:, 1:].set(Vagg0T)

    n = gb * S
    eye_gb = jnp.eye(gb, dtype=f32)
    Sel = jnp.kron(eye_gb, jnp.ones((1, S), f32))                     # [gb, n]
    SelSelT = jnp.kron(eye_gb, jnp.ones((S, S), f32))                 # [n, n]
    M = jnp.kron(jnp.ones((gb, 1), f32), jnp.eye(S, dtype=f32))       # [n, S]
    M2 = jnp.kron(jnp.ones((gb, 1), f32),
                  jnp.kron(jnp.eye(S, dtype=f32), jnp.ones((1, K), f32)))  # [n, S*K]
    Mcat = jnp.concatenate([M, M2], axis=-1)
    shift = (jnp.sum(jnp.abs(va0)) + jnp.sum(jnp.abs(vb0))).reshape(1, 1)

    slab, offs = _pack_param_slab([
        ('R', R), ('E1', E1), ('Wb1p', Wb1p), ('TK', TK),
        ('SelSelT', SelSelT), ('Sel', Sel), ('VB2', VB2),
        ('Mcat', Mcat), ('shift', shift)])

    outw = S + S * K + L10
    kernel = functools.partial(_agg_att_mean_kernel,
                               D=D, S=S, K=K, H0=H0, offs=offs)

    out = pl.pallas_call(
        kernel,
        out_shape=jax.ShapeDtypeStruct((b_pad, outw), f32),
        grid=(b_pad // gb,),
        in_specs=[
            pl.BlockSpec((n_blk, wcat), lambda i: (i, 0)),   # graph-block of rows
            pl.BlockSpec(slab.shape, lambda i: (0, 0)),      # params resident in VMEM
        ],
        out_specs=pl.BlockSpec((gb, outw), lambda i: (i, 0)),
        compiler_params=pltpu.CompilerParams(
            dimension_semantics=("parallel",)),              # v7x: shard across 2 TCs
    )(fcat, slab)

    out = out[:B]
    beta_fin = out[:, :S]                                    # Beta_hop      [B, S]
    beta1 = out[:, S:S + S * K].reshape(B, S, K)             # Beta_hop1     [B, S, K]
    fea = out[:, S + S * K:]                                 # fea_hop_mean  [B, L10]
    beta_step = jnp.concatenate([beta_fin[:, :, None], beta1], axis=-1)
    return fea.T, beta_step


# ---------------------------------------------------------------------------
# Pure-JAX reference mirroring the torch forward (for validation only)
# ---------------------------------------------------------------------------
def _leaky(v):
    return jnp.where(v >= 0, v, 0.01 * v)


def reference_forward(x, samples, sup_sizes, P):
    sup = [1] + list(sup_sizes)
    S, s2 = sup[1], sup[2]
    K = s2 // S
    B = samples.shape[0]
    D = x.shape[1]
    xf = x.astype(jnp.float32)

    def sa1(xx):   # Spatial_Attention_1, xx 4-D [..., 2*D]
        t1 = jnp.einsum('ij,jklm->iklm', P['sa1_V'], jnp.transpose(xx[..., :D], (3, 2, 1, 0)))
        t2 = jnp.einsum('ij,jklm->iklm', P['sa1_V'], jnp.transpose(xx[..., D:], (3, 2, 1, 0)))
        t3 = jnp.einsum('j,jklm->klm', P['sa1_w'], jnp.concatenate([t1, t2], 0))
        return jnp.transpose(jax.nn.softmax(_leaky(t3), axis=0), (2, 1, 0))

    # hop 1
    samples_temp = samples[:, -s2:].reshape(B, S, K)
    fea = xf[samples_temp]
    samples_temp_t = samples[:, -(S + s2):-s2]
    tgt = jnp.tile(xf[samples_temp_t][:, :, None, :], (1, 1, K, 1))
    Beta_hop1 = sa1(jnp.concatenate([tgt, fea], axis=3))                       # [B,S,K]
    t0 = jnp.einsum('ij,jklm->iklm', P['V1_h1'], jnp.transpose(fea, (3, 2, 1, 0)))
    fea_hop = jnp.squeeze(jnp.matmul(Beta_hop1[:, :, None, :],
                                     jnp.transpose(t0, (3, 2, 1, 0))), 2)
    temb = jnp.einsum('ij,jkl->ikl', P['V1_h1'], jnp.transpose(tgt[:, :, 0, :], (2, 1, 0)))
    con = jnp.concatenate([temb, jnp.transpose(fea_hop, (2, 1, 0))], 0)
    hop1 = jax.nn.sigmoid(jnp.einsum('ij,jkl->ikl', P['W_hops'], con))         # [H0,S,B]

    # hop 0
    fea0 = xf[samples_temp_t]
    tgt0 = jnp.tile(xf[samples[:, 0]][:, None, :], (1, S, 1))
    Beta_hop0 = sa1(jnp.concatenate([tgt0, fea0], 2)[:, None, :, :])           # [B,1,S]
    t0 = jnp.einsum('ij,jkl->ikl', P['V1_h1'], jnp.transpose(fea0, (2, 1, 0)))
    fea_hop0 = jnp.squeeze(jnp.matmul(Beta_hop0, jnp.transpose(t0, (2, 1, 0))), 1)
    temb0 = jnp.einsum('ij,jk->ik', P['V1_h1'], jnp.transpose(tgt0[:, 0, :], (1, 0)))
    con0 = jnp.concatenate([temb0, jnp.transpose(fea_hop0, (1, 0))], 0)
    hop0 = jax.nn.sigmoid(jnp.einsum('ij,jk->ik', P['W_hops'], con0))          # [H0,B]

    # final
    target_temp = jnp.tile(hop0[:, None, :], (1, S, 1))
    fea_tar = jnp.concatenate([target_temp, hop1], 0)                          # [2*H0,S,B]
    t1 = jnp.einsum('ij,jkl->ikl', P['sa0_V'], fea_tar[:DIM_HOP0])
    t2 = jnp.einsum('ij,jkl->ikl', P['sa0_V'], fea_tar[DIM_HOP0:])
    t3 = jnp.einsum('j,jkl->kl', P['sa0_w'], jnp.concatenate([t1, t2], 0))
    Beta_hop = jnp.transpose(jax.nn.softmax(_leaky(t3), axis=0), (1, 0))       # [B,S]
    t0 = jnp.einsum('ij,jkl->ikl', P['V1_h0'], hop1)                           # [L10,S,B]
    fea_final = jnp.squeeze(jnp.matmul(Beta_hop[:, None, :],
                                       jnp.transpose(t0, (2, 1, 0))), 1)       # [B,L10]
    Beta_step = jnp.concatenate([Beta_hop[:, :, None], Beta_hop1], 2)
    return fea_final.T, Beta_step


# ---------------------------------------------------------------------------
if __name__ == "__main__":
    key = jax.random.PRNGKey(0)
    k_x, k_s, *pk = jax.random.split(key, 9)

    def trunc(k, shape):   # deterministic stand-in for trunc_normal_(mean=-0.1, std=0.1)
        return jax.random.truncated_normal(k, -2.0, 2.0, shape, jnp.float32) * 0.1 - 0.1

    x = jax.random.normal(k_x, (NUM_NODES, N_DIM), dtype=jnp.float32)
    total_cols = 1 + SUP_SIZES[0] + SUP_SIZES[1]          # root + hop1 + hop2 samples
    samples = jax.random.randint(k_s, (BATCH, total_cols), 0, NUM_NODES, dtype=jnp.int32)

    params = {
        'sa1_V': trunc(pk[0], (L11, N_DIM)),              # Spatial_Attention_1.V1_h1
        'sa1_w': trunc(pk[1], (2 * L11,)),                # Spatial_Attention_1.w1_h1
        'sa0_V': trunc(pk[2], (L10, L11)),                # Spatial_Attention_0.V1_h0
        'sa0_w': trunc(pk[3], (2 * L10,)),                # Spatial_Attention_0.w1_h0
        'V1_h1': trunc(pk[4], (L11, N_DIM)),              # Aggregate_Att_Mean.V1_h1
        'V1_h0': trunc(pk[5], (L10, L11)),                # Aggregate_Att_Mean.V1_h0
        'W_hops': trunc(pk[6], (DIM_HOP0, DIM_HOP1)),     # Aggregate_Att_Mean.weights_hops_1
    }

    fea_t, beta_step = aggregate_att_mean(x, samples, SUP_SIZES, params)
    jax.block_until_ready((fea_t, beta_step))

    ref_fea_t, ref_beta = reference_forward(x, samples, SUP_SIZES, params)
    assert fea_t.shape == (L10, BATCH)
    assert beta_step.shape == (BATCH, SUP_SIZES[0], 1 + SUP_SIZES[1] // SUP_SIZES[0])
    np.testing.assert_allclose(np.asarray(fea_t), np.asarray(ref_fea_t), rtol=5e-2, atol=5e-2)
    np.testing.assert_allclose(np.asarray(beta_step), np.asarray(ref_beta), rtol=5e-2, atol=5e-2)
    print("KERNEL_OK")
</pallas_src>

<mosaic_0001>
module attributes {stable_mosaic.version = 11 : i64} {
  func.func @_agg_att_mean_kernel(%arg0: i32, %arg1: memref<8x32xf32, #tpu.memory_space<vmem>>, %arg2: memref<112x128xf32, #tpu.memory_space<vmem>>, %arg3: memref<2x20xf32, #tpu.memory_space<vmem>>) attributes {dimension_semantics = [#tpu.dimension_semantics<parallel>], iteration_bounds = array<i64: 1>, scalar_prefetch = 0 : i64, scratch_operands = 0 : i64, tpu.core_type = #tpu.core_type<tc>, window_params = [{transform_indices = @transform_0, window_bounds = array<i64: 8, 32>}, {pipeline_mode = #tpu.pipeline_mode<synchronous>, transform_indices = @transform_1, window_bounds = array<i64: 112, 128>}, {transform_indices = @transform_2, window_bounds = array<i64: 2, 20>}]} {
    %c0 = arith.constant 0 : index
    %c0_0 = arith.constant 0 : index
    %0 = vector.load %arg2[%c0, %c0_0] : memref<112x128xf32, #tpu.memory_space<vmem>>, vector<32x27xf32>
    %c32 = arith.constant 32 : index
    %c0_1 = arith.constant 0 : index
    %1 = vector.load %arg2[%c32, %c0_1] : memref<112x128xf32, #tpu.memory_space<vmem>>, vector<2x16xf32>
    %c40 = arith.constant 40 : index
    %c0_2 = arith.constant 0 : index
    %2 = vector.load %arg2[%c40, %c0_2] : memref<112x128xf32, #tpu.memory_space<vmem>>, vector<16x8xf32>
    %c56 = arith.constant 56 : index
    %c0_3 = arith.constant 0 : index
    %3 = vector.load %arg2[%c56, %c0_3] : memref<112x128xf32, #tpu.memory_space<vmem>>, vector<2x8xf32>
    %c64 = arith.constant 64 : index
    %c0_4 = arith.constant 0 : index
    %4 = vector.load %arg2[%c64, %c0_4] : memref<112x128xf32, #tpu.memory_space<vmem>>, vector<8x8xf32>
    %c72 = arith.constant 72 : index
    %c0_5 = arith.constant 0 : index
    %5 = vector.load %arg2[%c72, %c0_5] : memref<112x128xf32, #tpu.memory_space<vmem>>, vector<2x8xf32>
    %c80 = arith.constant 80 : index
    %c0_6 = arith.constant 0 : index
    %6 = vector.load %arg2[%c80, %c0_6] : memref<112x128xf32, #tpu.memory_space<vmem>>, vector<16x9xf32>
    %c96 = arith.constant 96 : index
    %c0_7 = arith.constant 0 : index
    %7 = vector.load %arg2[%c96, %c0_7] : memref<112x128xf32, #tpu.memory_space<vmem>>, vector<8x12xf32>
    %c104 = arith.constant 104 : index
    %c0_8 = arith.constant 0 : index
    %8 = vector.load %arg2[%c104, %c0_8] : memref<112x128xf32, #tpu.memory_space<vmem>>, vector<1x1xf32>
    %c0_9 = arith.constant 0 : index
    %c0_10 = arith.constant 0 : index
    %9 = vector.load %arg1[%c0_9, %c0_10] : memref<8x32xf32, #tpu.memory_space<vmem>>, vector<8x32xf32>
    %cst = arith.constant dense<0.000000e+00> : vector<8x27xf32>
    %10 = tpu.matmul %9, %0, %cst {dimension_numbers = #tpu.dot_dimension_numbers<[1], [0], [0], [1], [0, 0, 1, 1], [], []>} : vector<8x32xf32>, vector<32x27xf32>, vector<8x27xf32> -> vector<8x27xf32>
    %11 = vector.extract_strided_slice %10 {offsets = [0, 0], sizes = [8, 2], strides = [1, 1]} : vector<8x27xf32> to vector<8x2xf32>
    %cst_11 = arith.constant 0.000000e+00 : f32
    %12 = vector.broadcast %cst_11 : f32 to vector<8x2xf32>
    %13 = arith.cmpf oge, %11, %12 : vector<8x2xf32>
    %cst_12 = arith.constant 0.00999999977 : f32
    %14 = vector.broadcast %cst_12 : f32 to vector<8x2xf32>
    %15 = arith.mulf %14, %11 : vector<8x2xf32>
    %16 = arith.select %13, %11, %15 : vector<8x2xi1>, vector<8x2xf32>
    %17 = vector.extract_strided_slice %10 {offsets = [0, 2], sizes = [8, 1], strides = [1, 1]} : vector<8x27xf32> to vector<8x1xf32>
    %cst_13 = arith.constant 0.000000e+00 : f32
    %18 = vector.broadcast %cst_13 : f32 to vector<8x1xf32>
    %19 = arith.cmpf oge, %17, %18 : vector<8x1xf32>
    %cst_14 = arith.constant 0.00999999977 : f32
    %20 = vector.broadcast %cst_14 : f32 to vector<8x1xf32>
    %21 = arith.mulf %20, %17 : vector<8x1xf32>
    %22 = arith.select %19, %17, %21 : vector<8x1xi1>, vector<8x1xf32>
    %23 = vector.extract_strided_slice %10 {offsets = [0, 3], sizes = [8, 8], strides = [1, 1]} : vector<8x27xf32> to vector<8x8xf32>
    %24 = vector.extract_strided_slice %10 {offsets = [0, 11], sizes = [8, 8], strides = [1, 1]} : vector<8x27xf32> to vector<8x8xf32>
    %25 = vector.extract_strided_slice %10 {offsets = [0, 19], sizes = [8, 8], strides = [1, 1]} : vector<8x27xf32> to vector<8x8xf32>
    %cst_15 = arith.constant dense<0xFF800000> : vector<8xf32>
    %26 = vector.multi_reduction <maximumf>, %16, %cst_15 [1] : vector<8x2xf32> to vector<8xf32>
    %27 = vector.shape_cast %26 : vector<8xf32> to vector<8x1xf32>
    %28 = vector.broadcast %27 : vector<8x1xf32> to vector<8x2xf32>
    %29 = arith.subf %16, %28 : vector<8x2xf32>
    %30 = math.exp %29 : vector<8x2xf32>
    %cst_16 = arith.constant dense<0.000000e+00> : vector<8xf32>
    %31 = vector.multi_reduction <add>, %30, %cst_16 [1] : vector<8x2xf32> to vector<8xf32>
    %32 = vector.shape_cast %31 : vector<8xf32> to vector<8x1xf32>
    %33 = tpu.reciprocal %32 {approx = true} : vector<8x1xf32> -> vector<8x1xf32>
    %34 = vector.broadcast %33 : vector<8x1xf32> to vector<8x2xf32>
    %35 = arith.mulf %30, %34 : vector<8x2xf32>
    %36 = vector.extract_strided_slice %9 {offsets = [0, 16], sizes = [8, 16], strides = [1, 1]} : vector<8x32xf32> to vector<8x16xf32>
    %cst_17 = arith.constant dense<0.000000e+00> : vector<8x16xf32>
    %37 = tpu.matmul %35, %1, %cst_17 {dimension_numbers = #tpu.dot_dimension_numbers<[1], [0], [0], [1], [0, 0, 1, 1], [], []>} : vector<8x2xf32>, vector<2x16xf32>, vector<8x16xf32> -> vector<8x16xf32>
    %38 = arith.mulf %36, %37 : vector<8x16xf32>
    %cst_18 = arith.constant dense<0.000000e+00> : vector<8x8xf32>
    %39 = tpu.matmul %38, %2, %cst_18 {dimension_numbers = #tpu.dot_dimension_numbers<[1], [0], [0], [1], [0, 0, 1, 1], [], []>} : vector<8x16xf32>, vector<16x8xf32>, vector<8x8xf32> -> vector<8x8xf32>
    %cst_19 = arith.constant dense<0xFF800000> : vector<1xf32>
    %40 = vector.multi_reduction <maximumf>, %22, %cst_19 [0] : vector<8x1xf32> to vector<1xf32>
    %41 = vector.shape_cast %40 : vector<1xf32> to vector<1x1xf32>
    %42 = vector.broadcast %41 : vector<1x1xf32> to vector<8x1xf32>
    %43 = arith.subf %22, %42 : vector<8x1xf32>
    %44 = math.exp %43 : vector<8x1xf32>
    %cst_20 = arith.constant dense<0.000000e+00> : vector<8x1xf32>
    %45 = tpu.matmul %4, %44, %cst_20 {dimension_numbers = #tpu.dot_dimension_numbers<[1], [0], [0], [1], [0, 0, 1, 1], [], []>} : vector<8x8xf32>, vector<8x1xf32>, vector<8x1xf32> -> vector<8x1xf32>
    %46 = tpu.reciprocal %45 {approx = true} : vector<8x1xf32> -> vector<8x1xf32>
    %47 = arith.mulf %44, %46 : vector<8x1xf32>
    %48 = vector.broadcast %47 : vector<8x1xf32> to vector<8x8xf32>
    %49 = arith.mulf %48, %25 : vector<8x8xf32>
    %cst_21 = arith.constant dense<0.000000e+00> : vector<8x8xf32>
    %50 = tpu.matmul %4, %49, %cst_21 {dimension_numbers = #tpu.dot_dimension_numbers<[1], [0], [0], [1], [0, 0, 1, 1], [], []>} : vector<8x8xf32>, vector<8x8xf32>, vector<8x8xf32> -> vector<8x8xf32>
    %51 = arith.addf %24, %50 : vector<8x8xf32>
    %52 = arith.addf %23, %39 : vector<8x8xf32>
    %53 = tpu.concatenate %51, %52 in 1 : vector<8x8xf32>, vector<8x8xf32> -> vector<8x16xf32>
    %cst_22 = arith.constant 5.000000e-01 : f32
    %54 = vector.broadcast %cst_22 : f32 to vector<8x16xf32>
    %55 = arith.mulf %54, %53 : vector<8x16xf32>
    %56 = math.tanh %55 : vector<8x16xf32>
    %cst_23 = arith.constant 1.000000e+00 : f32
    %57 = vector.broadcast %cst_23 : f32 to vector<8x16xf32>
    %58 = arith.addf %56, %57 : vector<8x16xf32>
    %cst_24 = arith.constant 5.000000e-01 : f32
    %59 = vector.broadcast %cst_24 : f32 to vector<8x16xf32>
    %60 = arith.mulf %59, %58 : vector<8x16xf32>
    %cst_25 = arith.constant dense<0.000000e+00> : vector<8x9xf32>
    %61 = tpu.matmul %60, %6, %cst_25 {dimension_numbers = #tpu.dot_dimension_numbers<[1], [0], [0], [1], [0, 0, 1, 1], [], []>} : vector<8x16xf32>, vector<16x9xf32>, vector<8x9xf32> -> vector<8x9xf32>
    %62 = vector.extract_strided_slice %61 {offsets = [0, 0], sizes = [8, 1], strides = [1, 1]} : vector<8x9xf32> to vector<8x1xf32>
    %cst_26 = arith.constant 0.000000e+00 : f32
    %63 = vector.broadcast %cst_26 : f32 to vector<8x1xf32>
    %64 = arith.cmpf oge, %62, %63 : vector<8x1xf32>
    %cst_27 = arith.constant 0.00999999977 : f32
    %65 = vector.broadcast %cst_27 : f32 to vector<8x1xf32>
    %66 = arith.mulf %65, %62 : vector<8x1xf32>
    %67 = arith.select %64, %62, %66 : vector<8x1xi1>, vector<8x1xf32>
    %68 = vector.broadcast %8 : vector<1x1xf32> to vector<8x1xf32>
    %69 = arith.subf %67, %68 : vector<8x1xf32>
    %70 = math.exp %69 : vector<8x1xf32>
    %cst_28 = arith.constant dense<0.000000e+00> : vector<8x1xf32>
    %71 = tpu.matmul %4, %70, %cst_28 {dimension_numbers = #tpu.dot_dimension_numbers<[1], [0], [0], [1], [0, 0, 1, 1], [], []>} : vector<8x8xf32>, vector<8x1xf32>, vector<8x1xf32> -> vector<8x1xf32>
    %72 = tpu.reciprocal %71 {approx = true} : vector<8x1xf32> -> vector<8x1xf32>
    %73 = arith.mulf %70, %72 : vector<8x1xf32>
    %74 = vector.extract_strided_slice %61 {offsets = [0, 1], sizes = [8, 8], strides = [1, 1]} : vector<8x9xf32> to vector<8x8xf32>
    %cst_29 = arith.constant dense<0.000000e+00> : vector<8x8xf32>
    %75 = tpu.matmul %35, %3, %cst_29 {dimension_numbers = #tpu.dot_dimension_numbers<[1], [0], [0], [1], [0, 0, 1, 1], [], []>} : vector<8x2xf32>, vector<2x8xf32>, vector<8x8xf32> -> vector<8x8xf32>
    %76 = vector.extract_strided_slice %7 {offsets = [0, 0], sizes = [8, 4], strides = [1, 1]} : vector<8x12xf32> to vector<8x4xf32>
    %77 = vector.broadcast %73 : vector<8x1xf32> to vector<8x4xf32>
    %78 = arith.mulf %77, %76 : vector<8x4xf32>
    %79 = vector.extract_strided_slice %7 {offsets = [0, 4], sizes = [8, 8], strides = [1, 1]} : vector<8x12xf32> to vector<8x8xf32>
    %80 = arith.mulf %75, %79 : vector<8x8xf32>
    %81 = vector.broadcast %73 : vector<8x1xf32> to vector<8x8xf32>
    %82 = arith.mulf %81, %74 : vector<8x8xf32>
    %83 = tpu.concatenate %78, %80, %82 in 1 : vector<8x4xf32>, vector<8x8xf32>, vector<8x8xf32> -> vector<8x20xf32>
    %cst_30 = arith.constant dense<0.000000e+00> : vector<2x20xf32>
    %84 = tpu.matmul %5, %83, %cst_30 {dimension_numbers = #tpu.dot_dimension_numbers<[1], [0], [0], [1], [0, 0, 1, 1], [], []>} : vector<2x8xf32>, vector<8x20xf32>, vector<2x20xf32> -> vector<2x20xf32>
    %c0_31 = arith.constant 0 : index
    %c0_32 = arith.constant 0 : index
    %85 = vector.load %arg3[%c0_31, %c0_32] : memref<2x20xf32, #tpu.memory_space<vmem>>, vector<2x20xf32>
    tpu.vector_store %arg3[%c0_31, %c0_32], %84 {strides = array<i32>} : memref<2x20xf32, #tpu.memory_space<vmem>>, vector<2x20xf32>,
    return
  }
  func.func @transform_0(%arg0: i32) -> (i32, i32) {
    %c0_i32 = arith.constant 0 : i32
    %c0_i32_0 = arith.constant 0 : i32
    return %arg0, %c0_i32 : i32, i32
  }
  func.func @transform_1(%arg0: i32) -> (i32, i32) {
    %c0_i32 = arith.constant 0 : i32
    %c0_i32_0 = arith.constant 0 : i32
    %c0_i32_1 = arith.constant 0 : i32
    return %c0_i32, %c0_i32_0 : i32, i32
  }
  func.func @transform_2(%arg0: i32) -> (i32, i32) {
    %c0_i32 = arith.constant 0 : i32
    %c0_i32_0 = arith.constant 0 : i32
    return %arg0, %c0_i32 : i32, i32
  }
}

</mosaic_0001>

<bundles_post_ra>
// kernel: tpu_custom_call.1
= control target key start
LH: loop header
LB: loop body
LE: loop exit
PB: predicated region body
PF: predicated region fallthrough
CT: control target
= control target key end

     0   :  { %7 = vsyncpa [#allocation3], 0  ;;  %s1142_s0 = inlined_call_operand.hbm [shape: f32[8,32], index: 0, kind: input, shape index: {}]   ;;  %s1143_s1 = inlined_call_operand.hbm [shape: f32[112,128], index: 1, kind: input, shape index: {}]   ;;  %s1144_s2 = inlined_call_operand.hbm [shape: f32[2,20], index: 2, kind: output, shape index: {}]  }
   0x1   :  { %8 = vsyncpa [#allocation6], 0 }
   0x2   :  { %9 = vsyncpa [#allocation4], 0  ;;  %s1034_s9 = smov [#allocation2]   ;;  %s1035_s11 = smov [#allocation5]  }
   0x3   :  { %s16_s10 = sshll.u32 %s1034_s9, 4  ;;  %s25_s12 = sshll.u32 %s1035_s11, 4  ;;  %s17_s10 = int_to_ptr.vmem [resolvable:$true] %s16_s10  ;;  %s26_s12 = int_to_ptr.vmem [resolvable:$true] %s25_s12 }
   0x4   :  { %s976_s13 = scalar_lea.vmem %s17_s10, 128  ;;  %p981_p1 = scmp.lt.s32.totalorder %s17_s10, %s17_s10 }
   0x5   :  { %p977_p0 = scmp.ne.s32.totalorder %s17_s10, %s976_s13  ;;  %p982_p2 = scmp.lt.s32.totalorder %s976_s13, %s976_s13 }
   0x7   :  { %p983_p3 = por %p982_p2, %p981_p1 }
   0x9   :  { %p984_p4 = pnand %p983_p3, %p977_p0 }
   0xb   :  { %987 = shalt.err (!%p984_p4)
}
   0xc   :  { %19 = dma.hbm_to_vmem [thread:$0]  %s1142_s0, 128, %s17_s10, [#allocation3]  }
   0xd   :  { %s996_s16 = scalar_lea.vmem %s26_s12, 1792  ;;  %p1001_p6 = scmp.lt.s32.totalorder %s26_s12, %s26_s12 }
   0xe   :  { %p997_p5 = scmp.ne.s32.totalorder %s26_s12, %s996_s16  ;;  %p1002_p7 = scmp.lt.s32.totalorder %s996_s16, %s996_s16 }
  0x10   :  { %p1003_p8 = por %p1002_p7, %p1001_p6 }
  0x12   :  { %p1004_p9 = pnand %p1003_p8, %p997_p5 }
  0x14   :  { %1007 = shalt.err (!%p1004_p9)
}
  0x15   :  { %s1036_s17 = smov 128   ;;  %s1037_s18 = smov 8  }
  0x16   :  { %31 = dma.hbm_to_vmem [thread:$0]  %s1143_s1, 1792, %s26_s12, [#allocation6], %s1036_s17, %s1036_s17, %s1037_s18  }
  0x17   :  { %1028 = dma.done.wait [#allocation3], 128  }
  0x18   :  { %1029 = vsyncadd [#allocation3], 4294967168 }
  0x19   :  { %1030 = dma.done.wait [#allocation6], 1792  }
  0x1a   :  { %1031 = vsyncadd [#allocation6], 4294965504  ;;  %v1038_v0 = vmov 0.0   ;;  %vm1039_vm0 = vmmov 0   ;;  %v41_v1 = vld [vmem:[#allocation5 + $0x18] sm:$0xff]  ;;  %v40_v2 = vld [vmem:[#allocation5 + $0x10] sm:$0xff] }
  0x1b   :  { %876 = vmatprep.subr.mxu0 %v1038_v0  ;;  %884 = vmatprep.mubr.msk.f32.mxu0 %vm1039_vm0, %v1038_v0  ;;  %v39_v3 = vld [vmem:[#allocation5 + $0x8] sm:$0xff]  ;;  %v38_v4 = vld [vmem:[#allocation5] sm:$0xff]  ;;  %v52_v5 = vld [vmem:[#allocation2] sm:$0xff]  ;;  %vm53_vm1 = vcmask 261120   ;;  %vm130_vm3 = vcmask 15360   ;;  %vm300_vm4 = vcmask 23568  }
  0x1c   :  { %887 = vmatprep.subr.mxu1 %v1038_v0  ;;  %889 = vmatprep.mubr.msk.f32.mxu1 %vm1039_vm0, %v1038_v0  ;;  %v42_v25 = vld [vmem:[#allocation5 + $0x20] sm:$0x3]  ;;  %vm145_vm5 = vcmask 1041408   ;;  %s1040_s0 = smov 126   ;;  %v44_v30 = vld [vmem:[#allocation5 + $0x30] sm:$0xff]  ;;  %v43_v31 = vld [vmem:[#allocation5 + $0x28] sm:$0xff] }
  0x1d   :  { %877 = vmatpush3.msra.mxu0 %v41_v1  ;;  %888 = vmatpush3.msk.msra.mxu1 %vm145_vm5, %v42_v25  ;;  %s1041_s1 = smov 16   ;;  %s1042_s21 = smov 112   ;;  %vm227_vm6 = vcmask 130048   ;;  %v1107_v38 = vld [vmem:[#allocation5 + $0x40] sm:$0xff]  ;;  %vm315_vm7 = vcmask 64512   ;;  %v1043_v43 = vmov 2  }
  0x1e   :  { %878 = vmatprep.subr.mxu0 %v1038_v0  ;;  %892 = vmatprep.subr.mxu1 %v1038_v0  ;;  %s1044_s22 = smov 2   ;;  %s1045_s23 = smov 109   ;;  %v49_v56 = vld [vmem:[#allocation5 + $0x58] sm:$0xff]  ;;  %v48_v57 = vld [vmem:[#allocation5 + $0x50] sm:$0xff]  ;;  %v50_v58 = vld [vmem:[#allocation5 + $0x60] sm:$0xff]  ;;  %vm746_vm9 = vcmask 31744  }
  0x1f   :  { %879 = vmatpush3.msra.mxu0 %v40_v2  ;;  %951 = vset.pattern.permute.xlu1 %v1043_v43  ;;  %s1046_s24 = smov 11   ;;  %s1047_s25 = smov 3   ;;  %vm748_vm10 = vcmask 97280   ;;  %vm823_vm11 = vcmask 156672  }
  0x20   :  { %880 = vmatprep.subr.mxu0 %v1038_v0  ;;  %s1048_s26 = smov 117   ;;  %s1049_s27 = smov 5  }
  0x21   :  { %881 = vmatpush3.msra.mxu0 %v39_v3  ;;  %s1050_s28 = smov 124   ;;  %v45_v3 = vld [vmem:[#allocation5 + $0x38] sm:$0x3]  ;;  %s1052_s29 = smov 4  }
  0x22   :  { %882 = vmatprep.subr.mxu0 %v1038_v0  ;;  %s1053_s30 = smov [#allocation7]  }
  0x23   :  { %883 = vmatpush3.msra.mxu0 %v38_v4  ;;  %s831_s3 = sshll.u32 %s1053_s30, 4  ;;  %s832_s3 = int_to_ptr.vmem [resolvable:$true] %s831_s3 }
  0x24   :  { %885 = vmatmul.mubr.msk.f32.vlgmr.msra.gmra.mxu0 %vm53_vm1, %v52_v5  ;;  %904 = vmatprep.subr.mxu0 %v1038_v0  ;;  %s1008_s4 = scalar_lea.vmem %s832_s3, 32  ;;  %p1013_p11 = scmp.lt.s32.totalorder %s832_s3, %s832_s3 }
  0x25   :  { %906 = vmatprep.mubr.msk.f32.mxu0 %vm1039_vm0, %v1038_v0  ;;  %p1009_p10 = scmp.ne.s32.totalorder %s832_s3, %s1008_s4  ;;  %p1014_p12 = scmp.lt.s32.totalorder %s1008_s4, %s1008_s4 }
  0x27   :  { %p1015_p13 = por %p1014_p12, %p1013_p11 }
  0x29   :  { %p1016_p0 = pnand %p1015_p13, %p1009_p10 }
  0xe4   :  { %v1087_v6 = vpop.f32.mrf.mxu0 }
  0xe5   :  { %vm127_vm2 = vcmp.ge.f32.partialorder %v1087_v6, 0.0  ;;  %v128_v7 = vmul.f32 0.01, %v1087_v6 }
  0xe6   :  { %v886_v8 = vpop.f32.mrf.mxu0 }
  0xe7   :  { %v129_v9 = vsel %vm127_vm2, %v1087_v6, %v128_v7 }
  0xe8   :  { %v131_v10 = vsel %vm130_vm3, %v129_v9, -inf  ;;  %v301_v11 = vsel %vm300_vm4, %v129_v9, -inf }
  0xe9   :  { %132 = vmax.xlane.f32.xlu0 %v131_v10  ;;  %v302_v12 = vrot.slane %v301_v11, 4 }
  0xeb   :  { %v303_v13 = vmax.f32 %v301_v11, %v302_v12 }
  0xed   :  { %v304_v17 = vrot.slane %v303_v13, 2 }
  0xef   :  { %v305_v18 = vmax.f32 %v303_v13, %v304_v17 }
  0xf1   :  { %v306_v19 = vrot.slane %v305_v18, 1 }
  0xf3   :  { %v307_v20 = vmax.f32 %v305_v18, %v306_v19 }
  0xf5   :  { %v308_v23 = vsub.f32 %v129_v9, %v307_v20 }
  0xf7   :  { %v309_v24 = vmul.f32 1.442695, %v308_v23 }
 0x172   :  { %v133_v14 = vpop.xlane.xlu0 %132 }
 0x173   :  { %v134_v15 = vsub.f32 %v129_v9, %v133_v14  ;;  %v1051_v14 = vmov 0  }
 0x174   :  { %953 = vset.pattern.permute.xlu0 %v1051_v14 }
 0x175   :  { %v135_v16 = vmul.f32 1.442695, %v134_v15 }
 0x177   :  { %954 = vpow2.f32 %v135_v16 }
 0x178   :  { %956 = vpow2.f32 %v309_v24 }
 0x184   :  { %v955_v21 = vpop.eup %954 }
 0x185   :  { %v137_v22 = vsel %vm130_vm3, %v955_v21, 0.0  ;;  %v957_v26 = vpop.eup %956 }
 0x186   :  { %138 = vadd.xlane.f32.xlu0 %v137_v22 }
 0x19c   :  { %312 = vrot.lane.b32.xlu0 %v957_v26, %s1040_s0 }
 0x20f   :  { %v139_v27 = vpop.xlane.xlu0 %138 }
 0x210   :  { %958 = vrcp.f32 %v139_v27 }
 0x213   :  { %v313_v37 = vpop.permute.xlu0 %312 }
 0x21d   :  { %v959_v28 = vpop.eup %958 }
 0x21e   :  { %v1096_v29 = vmul.f32 %v959_v28, %v955_v21 }
 0x220   :  { %890 = vmatmul.mubr.msk.f32.vlgmr.msra.gmra.mxu1 %vm130_vm3, %v1096_v29 }
 0x221   :  { %896 = vmatprep.mubr.msk.f32.mxu1 %vm1039_vm0, %v1038_v0  ;;  %893 = vmatpush3.msra.mxu1 %v44_v30 }
 0x222   :  { %894 = vmatprep.subr.mxu1 %v1038_v0 }
 0x223   :  { %895 = vmatpush3.msra.mxu1 %v43_v31 }
 0x224   :  { %899 = vmatprep.subr.mxu1 %v1038_v0 }
 0x2e0   :  { %v215_v32 = vpop.f32.mrf.mxu1 }
 0x2e1   :  { %220 = vrot.lane.b32.xlu1 %v215_v32, %s1041_s1 }
 0x2e2   :  { %v891_v33 = vpop.f32.mrf.mxu1 }
 0x353   :  { %v221_v34 = vpop.permute.xlu1 %220 }
 0x354   :  { %v223_v35 = vmul.f32 %v221_v34, %v52_v5  ;;  %v848_v5 = vld [vmem:[#allocation5 + $0x68] ss:$0 sm:$0xff] }
 0x356   :  { %225 = vrot.lane.b32.xlu1 %v223_v35, %s1042_s21 }
 0x3c8   :  { %v226_v36 = vpop.permute.xlu1 %225 }
 0x3c9   :  { %897 = vmatmul.mubr.msk.f32.vlgmr.msra.gmra.mxu1 %vm227_vm6, %v226_v36 }
 0x3ca   :  { %900 = vmatpush3.msra.mxu1 %v313_v37  ;;  %901 = vmatprep.mubr.msk.f32.mxu1 %vm1039_vm0, %v1038_v0 }
 0x3cb   :  { %909 = vmatprep.subr.mxu1 %v1038_v0 }
 0x3cd   :  { %902 = vmatmul.mubr.msk.f32.vlgmr.msra.gmra.mxu1 %vm315_vm7, %v1107_v38 }
 0x3ce   :  { %913 = vmatprep.mubr.msk.f32.mxu1 %vm1039_vm0, %v1038_v0  ;;  %910 = vmatpush3.msra.mxu1 %v49_v56 }
 0x3cf   :  { %911 = vmatprep.subr.mxu1 %v1038_v0 }
 0x3d0   :  { %912 = vmatpush3.msra.mxu1 %v48_v57 }
 0x3d1   :  { %921 = vmatprep.subr.mxu1 %v1038_v0 }
 0x489   :  { %v296_v39 = vpop.f32.mrf.mxu1 }
 0x48b   :  { %v898_v40 = vpop.f32.mrf.mxu1 }
 0x48d   :  { %v385_v41 = vpop.f32.mrf.mxu1 }
 0x48e   :  { %960 = vrcp.f32 %v385_v41 }
 0x48f   :  { %v903_v42 = vpop.f32.mrf.mxu1 }
 0x49b   :  { %v961_v44 = vpop.eup %960 }
 0x49c   :  { %391 = vrot.lane.b32.xlu1 %v961_v44, %s1044_s22 }
 0x50e   :  { %v392_v45 = vpop.permute.xlu1 %391 }
 0x50f   :  { %v394_v46 = vmul.f32 %v957_v26, %v392_v45  ;;  %v47_v26 = vld [vmem:[#allocation5 + $0x48] sm:$0x3] }
 0x511   :  { %397 = vperm.xlu1 %951, %v394_v46  }
 0x515   :  { %952 = vset.pattern.permute.xlu1 %v1051_v14 }
 0x58c   :  { %v398_v47 = vpop.permute.xlu1 %397 }
 0x58d   :  { %v400_v48 = vmul.f32 %v398_v47, %v1087_v6 }
 0x58f   :  { %402 = vrot.lane.b32.xlu1 %v400_v48, %s1045_s23 }
 0x601   :  { %v403_v49 = vpop.permute.xlu1 %402 }
 0x602   :  { %905 = vmatpush3.msra.mxu0 %v403_v49 }
 0x603   :  { %907 = vmatmul.mubr.msk.f32.vlgmr.msra.gmra.mxu0 %vm315_vm7, %v1107_v38  ;;  %916 = vmatprep.subr.mxu0 %v1038_v0 }
 0x604   :  { %918 = vmatprep.mubr.msk.f32.mxu0 %vm1039_vm0, %v1038_v0 }
 0x6c3   :  { %v471_v50 = vpop.f32.mrf.mxu0 }
 0x6c4   :  { %476 = vrot.lane.b32.xlu1 %v471_v50, %s1046_s24 }
 0x6c5   :  { %v908_v51 = vpop.f32.mrf.mxu0 }
 0x6c8   :  { %481 = vrot.lane.b32.xlu1 %v296_v39, %s1047_s25 }
 0x736   :  { %v477_v52 = vpop.permute.xlu1 %476 }
 0x737   :  { %v479_v53 = vadd.f32 %v477_v52, %v1087_v6 }
 0x739   :  { %486 = vrot.lane.b32.xlu1 %v479_v53, %s1048_s26 }
 0x73a   :  { %v482_v54 = vpop.permute.xlu1 %481 }
 0x73b   :  { %v484_v55 = vadd.f32 %v482_v54, %v1087_v6 }
 0x73d   :  { %490 = vrot.lane.b32.xlu0 %v484_v55, %s1049_s27 }
 0x741   :  { %733 = vrot.lane.b32.xlu0 %v50_v58, %s1050_s28 }
 0x7ab   :  { %v487_v59 = vpop.permute.xlu1 %486 }
 0x7af   :  { %v491_v60 = vpop.permute.xlu0 %490 }
 0x7b0   :  { %v493_v61 = vsel %vm315_vm7, %v487_v59, %v491_v60 }
 0x7b1   :  { %v494_v62 = vmul.f32 0.5, %v493_v61 }
 0x7b3   :  { %962 = vtanh.f32 %v494_v62  ;;  %v734_v19 = vpop.permute.xlu0 %733 }
 0x7c0   :  { %v963_v63 = vpop.eup %962 }
 0x7c1   :  { %v496_v1 = vadd.f32 1.0, %v963_v63 }
 0x7c3   :  { %v497_v2 = vmul.f32 0.5, %v496_v1 }
 0x7c5   :  { %914 = vmatmul.mubr.msk.f32.vlgmr.msra.gmra.mxu1 %vm227_vm6, %v497_v2 }
 0x7c6   :  { %922 = vmatpush3.msk.msra.mxu1 %vm145_vm5, %v45_v3  ;;  %923 = vmatprep.mubr.msk.f32.mxu1 %vm1039_vm0, %v1038_v0 }
 0x7c9   :  { %924 = vmatmul.mubr.msk.f32.vlgmr.msra.gmra.mxu1 %vm130_vm3, %v1096_v29 }
 0x885   :  { %v567_v4 = vpop.f32.mrf.mxu1 }
 0x886   :  { %vm571_vm8 = vcmp.ge.f32.partialorder %v567_v4, 0.0  ;;  %v572_v6 = vmul.f32 0.01, %v567_v4 }
 0x887   :  { %v915_v7 = vpop.f32.mrf.mxu1 }
 0x888   :  { %v573_v8 = vsel %vm571_vm8, %v567_v4, %v572_v6 }
 0x889   :  { %v578_v9 = vsub.f32 %v573_v8, %v848_v5  ;;  %v722_v10 = vpop.f32.mrf.mxu1 }
 0x88a   :  { %v736_v20 = vmul.f32 %v734_v19, %v722_v10 }
 0x88b   :  { %v579_v11 = vmul.f32 1.442695, %v578_v9  ;;  %v925_v12 = vpop.f32.mrf.mxu1 }
 0x88d   :  { %964 = vpow2.f32 %v579_v11 }
 0x89a   :  { %v965_v13 = vpop.eup %964 }
 0x89b   :  { %917 = vmatpush3.msra.mxu0 %v965_v13 }
 0x89c   :  { %919 = vmatmul.mubr.msk.f32.vlgmr.msra.gmra.mxu0 %vm315_vm7, %v1107_v38  ;;  %926 = vmatprep.subr.mxu0 %v1038_v0 }
 0x89d   :  { %928 = vmatprep.mubr.msk.f32.mxu0 %vm1039_vm0, %v1038_v0 }
 0x95c   :  { %v647_v15 = vpop.f32.mrf.mxu0 }
 0x95d   :  { %966 = vrcp.f32 %v647_v15 }
 0x95e   :  { %v920_v16 = vpop.f32.mrf.mxu0 }
 0x96a   :  { %v967_v17 = vpop.eup %966 }
 0x96b   :  { %v652_v18 = vmul.f32 %v967_v17, %v965_v13 }
 0x96d   :  { %728 = vperm.xlu1 %952, %v652_v18  }
 0x971   :  { %739 = vrot.lane.b32.xlu1 %v736_v20, %s1052_s29 }
 0x9e8   :  { %v729_v21 = vpop.permute.xlu1 %728 }
 0x9e9   :  { %v737_v22 = vmul.f32 %v729_v21, %v567_v4  ;;  %v731_v0 = vmul.f32 %v729_v21, %v50_v58 }
 0x9eb   :  { %743 = vrot.lane.b32.xlu0 %v737_v22, %s1046_s24 }
 0x9ec   :  { %v740_v23 = vpop.permute.xlu1 %739 }
 0x9ed   :  { %v747_v24 = vsel %vm746_vm9, %v731_v0, %v740_v23 }
 0xa5d   :  { %v744_v25 = vpop.permute.xlu0 %743 }
 0xa5e   :  { %v749_v27 = vsel %vm748_vm10, %v747_v24, %v744_v25 }
 0xa5f   :  { %927 = vmatpush3.msra.mxu0 %v749_v27 }
 0xa60   :  { %929 = vmatmul.mubr.msk.f32.vlgmr.msra.gmra.mxu0 %vm315_vm7, %v47_v26 }
 0xb20   :  { %v819_v28 = vpop.f32.mrf.mxu0 }
 0xb21   :  { %824 = vst.msk [vmem:[#allocation7] sm:$0x3] %vm823_vm11, %v819_v28 }
 0xb22   :  { %v930_v29 = vpop.f32.mrf.mxu0 }
 0xb23   :  { %1019 = shalt.err (!%p1016_p0)
}
 0xb24   :  { %834 = dma.vmem_to_hbm [thread:$0]  %s832_s3, 32, %s1144_s2, [#allocation4]  }
 0xb25   :  { %1032 = dma.done.wait [#allocation4], 32  }
 0xb26   :  { %1033 = vsyncadd [#allocation4], 4294967264 }
 0xb27   :  { %838 = vsyncpa [#allocation3], 1 }
 0xb28   :  { %839 = vsyncpa [#allocation6], 1 }
 0xb29   :  { %840 = vsyncpa [#allocation4], 1 }

</bundles_post_ra>
